<compile_context>
chip_gen: v6e
topology: v6e:2x2x1
jax: 0.10.0
libtpu: 0.0.40
codegen_flags: <defaults>
</compile_context>

<pallas_src>
import functools

import jax
import jax.numpy as jnp
from jax.experimental import pallas as pl
from jax.experimental.pallas import tpu as pltpu

EPS = 1e-5
_TINY_TOTAL = 1 << 20        # below this working set, never split: ~0.35us/step overhead dominates
_SMALL_BLOCK = 256 << 10     # small blocks + long grid -> deepen pipelining


def _cdiv(a, b):
    return -(-a // b)


def _hw_budgets():
    """(per-step block budget bytes, scoped vmem_limit_bytes), generation aware.

    v5e/v6e: 128 MiB VMEM -> big blocks amortize per-step overhead.
    v7x: 64 MiB per TensorCore -> keep headroom (x/y double-buffering and the
    in-kernel f32 working copy are counted in the row-bytes math below).
    Falls back to the conservative (v7x-safe) numbers if the query fails.
    """
    vmem = 64 << 20
    try:
        vmem = int(pltpu.get_tpu_info().vmem_capacity_bytes)
    except Exception:
        pass
    if vmem >= (96 << 20):            # v5e / v6e class
        return 6 << 20, 64 << 20
    return 3 << 20, 48 << 20          # v7x class


def _batch_tile(B, row_bytes, budget):
    """Largest batch tile whose per-step working set fits `budget`.

    Keeps the feature dim whole (contiguous DMA rows) and splits batch first.
    Grid-step count is made even so neither v7x TensorCore idles on a tail
    step; tiny totals are not split at all.
    """
    total = B * row_bytes
    if B == 1 or (total <= _TINY_TOTAL and total <= budget):
        return B
    tb = max(1, min(B, budget // max(row_bytes, 1)))
    nb = _cdiv(B, tb)
    if nb == 1:
        nb = 2                        # give both TensorCores work
    if nb > 1 and nb % 2 == 1:
        nb += 1                       # even number of steps along the parallel axis
    nb = min(nb, B)
    return _cdiv(B, nb)


def _block_spec(shape, index_map, *, block_bytes=0, n_steps=1):
    # Fallback lever from the perf review: when blocks must stay small and the
    # grid is long, a third pipeline buffer hides DMA latency behind the very
    # short per-step compute.  Prefer bigger tiles first (done above).
    if block_bytes and block_bytes < _SMALL_BLOCK and n_steps >= 4:
        return pl.BlockSpec(shape, index_map, pipeline_mode=pl.Buffered(3))
    return pl.BlockSpec(shape, index_map)


_SMEM = pl.BlockSpec(memory_space=pltpu.MemorySpace.SMEM)


# ------------------------------- norm kernels -------------------------------
def _norm_fused_kernel(w_ref, b_ref, x_ref, y_ref, stats_ref):
    # x_ref: (TB, L, D); y_ref: (TB, tail, D); stats_ref: (TB, 2, D) = [mean, std]
    L = x_ref.shape[1]
    tail = y_ref.shape[1]

    x = x_ref[...].astype(jnp.float32)
    # Single-pass stats: var = E[x^2] - E[x]^2 (module uses unbiased=False).
    s1 = jnp.sum(x, axis=1, keepdims=True)
    s2 = jnp.sum(x * x, axis=1, keepdims=True)
    inv_L = 1.0 / L
    mean = s1 * inv_L
    var = jnp.maximum(s2 * inv_L - mean * mean, 0.0)     # clamp cancellation
    std = jnp.sqrt(var + EPS)

    # Fold normalize + affine into one FMA:  y = xt*scale + shift
    scale = (1.0 / std) * w_ref[0]
    shift = b_ref[0] - mean * scale

    # Re-read only the trailing tail timesteps (keeps the full slab's live
    # range short).
    # TODO(synk): if (L - tail) % 8 != 0 this slice crosses a sublane tile
    # boundary; padding the tail up in the wrapper would avoid the shuffle.
    xt = x_ref[:, L - tail:, :].astype(jnp.float32)
    # TODO(synk): custom nonlinear `mapper` callables are not representable
    # generically; identity (the module default) is assumed.
    y_ref[...] = (xt * scale + shift).astype(y_ref.dtype)
    stats_ref[:, 0:1, :] = mean.astype(stats_ref.dtype)
    stats_ref[:, 1:2, :] = std.astype(stats_ref.dtype)


def _stats_chunk_kernel(x_ref, stats_ref, acc_ref, *, seq_len):
    # Long-sequence path: accumulate sum / sum-of-squares over L chunks.
    li = pl.program_id(1)
    tl = x_ref.shape[1]

    @pl.when(li == 0)
    def _init():
        acc_ref[...] = jnp.zeros_like(acc_ref)

    x = x_ref[...].astype(jnp.float32)
    # Mask rows beyond the true sequence length (cdiv padding on the edge chunk).
    row = jax.lax.broadcasted_iota(jnp.int32, x.shape, 1) + li * tl
    x = jnp.where(row < seq_len, x, 0.0)
    acc_ref[:, 0:1, :] += jnp.sum(x, axis=1, keepdims=True)
    acc_ref[:, 1:2, :] += jnp.sum(x * x, axis=1, keepdims=True)

    @pl.when(li == pl.num_programs(1) - 1)
    def _finalize():
        inv_L = 1.0 / seq_len
        mean = acc_ref[:, 0:1, :] * inv_L
        var = jnp.maximum(acc_ref[:, 1:2, :] * inv_L - mean * mean, 0.0)
        stats_ref[:, 0:1, :] = mean.astype(stats_ref.dtype)
        stats_ref[:, 1:2, :] = jnp.sqrt(var + EPS).astype(stats_ref.dtype)


def _apply_norm_kernel(w_ref, b_ref, xt_ref, stats_ref, y_ref):
    mean = stats_ref[:, 0:1, :]
    std = stats_ref[:, 1:2, :]
    scale = (1.0 / std) * w_ref[0]
    shift = b_ref[0] - mean * scale
    y_ref[...] = (xt_ref[...].astype(jnp.float32) * scale + shift).astype(y_ref.dtype)


def transform_norm(x, affine_weight, affine_bias, tail, *, block_budget_bytes=None):
    """mode == 'norm'. Returns (y, mean, stdev)."""
    B, L, D = x.shape
    itemsize = jnp.dtype(x.dtype).itemsize
    hw_budget, vmem_limit = _hw_budgets()
    budget = int(block_budget_bytes) if block_budget_bytes else hw_budget

    # Per-batch-row bytes: x (double-buffered native + f32 working copy),
    # y tail (double-buffered + f32 temp), stats (tiny).
    row_bytes = D * ((L + tail) * (2 * itemsize + 4) + 4 * 4)

    if row_bytes <= budget:
        # ---- fused path: whole L resident per step ----
        tb = _batch_tile(B, row_bytes, budget)
        nb = _cdiv(B, tb)
        y, stats = pl.pallas_call(
            _norm_fused_kernel,
            out_shape=(
                jax.ShapeDtypeStruct((B, tail, D), x.dtype),
                jax.ShapeDtypeStruct((B, 2, D), jnp.float32),
            ),
            grid=(nb,),
            in_specs=[
                _SMEM,                                             # affine_weight
                _SMEM,                                             # affine_bias
                _block_spec((tb, L, D), lambda i: (i, 0, 0),
                            block_bytes=tb * L * D * itemsize, n_steps=nb),
            ],
            out_specs=(
                pl.BlockSpec((tb, tail, D), lambda i: (i, 0, 0)),  # y
                pl.BlockSpec((tb, 2, D), lambda i: (i, 0, 0)),     # [mean, std]
            ),
            compiler_params=pltpu.CompilerParams(
                dimension_semantics=("parallel",),
                vmem_limit_bytes=vmem_limit,
            ),
        )(affine_weight, affine_bias, x)
        return y, stats[:, 0:1, :], stats[:, 1:2, :]

    # ---- long-sequence path: chunk L, accumulate sum/sumsq in VMEM scratch ----
    chunk_row = D * (2 * itemsize + 4)
    tl = max(8, (budget // max(chunk_row, 1)) // 8 * 8)
    tl = min(tl, L)
    nl = _cdiv(L, tl)
    tb = _batch_tile(B, tl * chunk_row + 4 * 4 * D, budget)
    nb = _cdiv(B, tb)
    stats = pl.pallas_call(
        functools.partial(_stats_chunk_kernel, seq_len=L),
        out_shape=jax.ShapeDtypeStruct((B, 2, D), jnp.float32),
        grid=(nb, nl),
        in_specs=[pl.BlockSpec((tb, tl, D), lambda i, l: (i, l, 0))],
        out_specs=pl.BlockSpec((tb, 2, D), lambda i, l: (i, 0, 0)),
        scratch_shapes=[pltpu.VMEM((tb, 2, D), jnp.float32)],
        compiler_params=pltpu.CompilerParams(
            dimension_semantics=("parallel", "arbitrary"),
            vmem_limit_bytes=vmem_limit,
        ),
    )(x)

    # TODO(synk): the tail slice below is an extra XLA copy; a manual-DMA gather
    # of the tail window (memory_space=pl.ANY) would avoid the extra HBM traffic.
    x_tail = x[:, L - tail:, :]
    tail_row = D * (tail * (2 * itemsize + 4) + 2 * 4)
    tb2 = _batch_tile(B, tail_row, budget)
    nb2 = _cdiv(B, tb2)
    y = pl.pallas_call(
        _apply_norm_kernel,
        out_shape=jax.ShapeDtypeStruct((B, tail, D), x.dtype),
        grid=(nb2,),
        in_specs=[
            _SMEM,
            _SMEM,
            _block_spec((tb2, tail, D), lambda i: (i, 0, 0),
                        block_bytes=tb2 * tail * D * itemsize, n_steps=nb2),
            pl.BlockSpec((tb2, 2, D), lambda i: (i, 0, 0)),
        ],
        out_specs=pl.BlockSpec((tb2, tail, D), lambda i: (i, 0, 0)),
        compiler_params=pltpu.CompilerParams(
            dimension_semantics=("parallel",),
            vmem_limit_bytes=vmem_limit,
        ),
    )(affine_weight, affine_bias, x_tail, stats)
    return y, stats[:, 0:1, :], stats[:, 1:2, :]


# ------------------------------ denorm kernel -------------------------------
def _denorm_kernel(w_ref, b_ref, x_ref, mean_ref, std_ref, y_ref):
    # y = (x - b_old) / (w_old + eps^2) * std + mean  ==  x*scale + shift
    inv_w = 1.0 / (w_ref[0] + EPS * EPS)          # one scalar reciprocal per step
    scale = std_ref[...].astype(jnp.float32) * inv_w
    shift = mean_ref[...].astype(jnp.float32) - b_ref[0] * scale
    # TODO(synk): custom `mapper_inv` callables are assumed identity (module default).
    y_ref[...] = (x_ref[...].astype(jnp.float32) * scale + shift).astype(y_ref.dtype)


def transform_denorm(x, mean, stdev, affine_weight_old, affine_bias_old, *,
                     donate_x=False, block_budget_bytes=None):
    """mode == 'denorm'."""
    B, T, D = x.shape
    itemsize = jnp.dtype(x.dtype).itemsize
    hw_budget, vmem_limit = _hw_budgets()
    budget = int(block_budget_bytes) if block_budget_bytes else hw_budget

    elem_bytes = 4 * itemsize + 4         # x dbl-buf + y dbl-buf + f32 temp
    tt = T
    if T * D * elem_bytes > budget and T > 8:
        tt = max(8, (budget // max(D * elem_bytes, 1)) // 8 * 8)
        tt = min(tt, T)
    nt = _cdiv(T, tt)
    row_bytes = tt * D * elem_bytes + 2 * 2 * D * 4
    tb = _batch_tile(B, row_bytes, budget)
    nb = _cdiv(B, tb)

    kwargs = {}
    if donate_x:
        # x is input index 2 of (w, b, x, mean, std): write the result in place.
        kwargs["input_output_aliases"] = {2: 0}

    return pl.pallas_call(
        _denorm_kernel,
        out_shape=jax.ShapeDtypeStruct((B, T, D), x.dtype),
        grid=(nb, nt),
        in_specs=[
            _SMEM,                                               # affine_weight_old
            _SMEM,                                               # affine_bias_old
            _block_spec((tb, tt, D), lambda i, t: (i, t, 0),
                        block_bytes=tb * tt * D * itemsize, n_steps=nb * nt),
            pl.BlockSpec((tb, 1, D), lambda i, t: (i, 0, 0)),    # mean
            pl.BlockSpec((tb, 1, D), lambda i, t: (i, 0, 0)),    # stdev
        ],
        out_specs=pl.BlockSpec((tb, tt, D), lambda i, t: (i, t, 0)),
        compiler_params=pltpu.CompilerParams(
            dimension_semantics=("parallel", "parallel"),
            vmem_limit_bytes=vmem_limit,
        ),
        **kwargs,
    )(affine_weight_old, affine_bias_old, x, mean, stdev)


# -------------------------------- reference ---------------------------------
def _ref_norm(x, w, b, tail):
    x = x.astype(jnp.float32)
    mean = jnp.mean(x, axis=1, keepdims=True)
    std = jnp.sqrt(jnp.var(x, axis=1, keepdims=True) + EPS)   # ddof=0 == unbiased=False
    y = (x[:, -tail:] - mean) / std * w[0] + b[0]
    return y, mean, std


def _ref_denorm(x, mean, std, w_old, b_old):
    return (x.astype(jnp.float32) - b_old[0]) / (w_old[0] + EPS * EPS) * std + mean


if __name__ == "__main__":
    key = jax.random.PRNGKey(0)
    k0, k1, k2, k3 = jax.random.split(key, 4)

    # ---- case 1: default (generation-aware) budgets, lane-dense D ----
    B, L, D, tail = 8, 32, 256, 16
    x = jax.random.normal(k0, (B, L, D), dtype=jnp.float32) * 3.0 + 1.5
    w = jnp.array([1.3], dtype=jnp.float32)
    b = jnp.array([0.25], dtype=jnp.float32)

    y, mean, stdev = transform_norm(x, w, b, tail)
    x_rec = transform_denorm(y, mean, stdev, w, b)
    jax.block_until_ready((y, mean, stdev, x_rec))

    y_ref, mean_ref, std_ref = _ref_norm(x, w, b, tail)
    x_rec_ref = _ref_denorm(y_ref, mean_ref, std_ref, w, b)
    assert jnp.allclose(mean, mean_ref, atol=1e-5, rtol=1e-5)
    assert jnp.allclose(stdev, std_ref, atol=1e-5, rtol=1e-5)
    assert jnp.allclose(y, y_ref, atol=1e-4, rtol=1e-4)
    assert jnp.allclose(x_rec, x_rec_ref, atol=1e-4, rtol=1e-4)
    assert jnp.allclose(x_rec, x[:, -tail:], atol=1e-3, rtol=1e-3)

    # denorm with in-place aliasing (y not used afterwards)
    x_rec_d = transform_denorm(y, mean, stdev, w, b, donate_x=True)
    jax.block_until_ready(x_rec_d)
    assert jnp.allclose(x_rec_d, x_rec_ref, atol=1e-4, rtol=1e-4)

    # ---- case 2: forced small budget -> multi-block fused path (+Buffered(3)) ----
    y2, m2, s2 = transform_norm(x, w, b, tail, block_budget_bytes=192 * 1024)
    jax.block_until_ready(y2)
    assert jnp.allclose(y2, y_ref, atol=1e-4, rtol=1e-4)
    assert jnp.allclose(m2, mean_ref, atol=1e-5, rtol=1e-5)
    assert jnp.allclose(s2, std_ref, atol=1e-5, rtol=1e-5)

    # ---- case 3: forced tiny budget -> long-sequence (L-chunked) path ----
    B3, L3, D3, tail3 = 4, 60, 128, 24
    x3 = jax.random.normal(k1, (B3, L3, D3), dtype=jnp.float32) * 2.0 - 0.5
    y3, m3, s3 = transform_norm(x3, w, b, tail3, block_budget_bytes=32 * 1024)
    xr3 = transform_denorm(y3, m3, s3, w, b, block_budget_bytes=32 * 1024)
    jax.block_until_ready(xr3)
    y3_ref, m3_ref, s3_ref = _ref_norm(x3, w, b, tail3)
    assert jnp.allclose(m3, m3_ref, atol=1e-5, rtol=1e-5)
    assert jnp.allclose(s3, s3_ref, atol=1e-5, rtol=1e-5)
    assert jnp.allclose(y3, y3_ref, atol=1e-4, rtol=1e-4)
    assert jnp.allclose(xr3, x3[:, -tail3:], atol=1e-3, rtol=1e-3)

    # ---- case 4: D < 128 (full-D block, equals the array dim -> legal) ----
    B4, L4, D4, tail4 = 2, 16, 8, 8
    x4 = jax.random.normal(k2, (B4, L4, D4), dtype=jnp.float32)
    w4 = jnp.ones((1,), jnp.float32)
    b4 = jnp.zeros((1,), jnp.float32)
    y4, m4, s4 = transform_norm(x4, w4, b4, tail4)
    xr4 = transform_denorm(y4, m4, s4, w4, b4)
    jax.block_until_ready(xr4)
    y4_ref, m4_ref, s4_ref = _ref_norm(x4, w4, b4, tail4)
    assert jnp.allclose(y4, y4_ref, atol=1e-4, rtol=1e-4)
    assert jnp.allclose(m4, m4_ref, atol=1e-5, rtol=1e-5)
    assert jnp.allclose(s4, s4_ref, atol=1e-5, rtol=1e-5)
    assert jnp.allclose(xr4, x4[:, -tail4:], atol=1e-3, rtol=1e-3)

    # ---- case 5: denorm with forced budget -> T-axis split path ----
    B5, T5, D5 = 4, 40, 128
    x5 = jax.random.normal(k3, (B5, T5, D5), dtype=jnp.float32)
    m5 = jax.random.normal(jax.random.PRNGKey(7), (B5, 1, D5), dtype=jnp.float32)
    s5 = jnp.abs(jax.random.normal(jax.random.PRNGKey(8), (B5, 1, D5), dtype=jnp.float32)) + 0.5
    xr5 = transform_denorm(x5, m5, s5, w, b, block_budget_bytes=32 * 1024)
    jax.block_until_ready(xr5)
    assert jnp.allclose(xr5, _ref_denorm(x5, m5, s5, w, b), atol=1e-4, rtol=1e-4)

    print("KERNEL_OK")
</pallas_src>

<mosaic_0001>
module attributes {stable_mosaic.version = 11 : i64} {
  func.func @_norm_fused_kernel(%arg0: i32, %arg1: memref<1xf32, #tpu.memory_space<smem>>, %arg2: memref<1xf32, #tpu.memory_space<smem>>, %arg3: memref<4x32x256xf32, #tpu.memory_space<vmem>>, %arg4: memref<4x16x256xf32, #tpu.memory_space<vmem>>, %arg5: memref<4x2x256xf32, #tpu.memory_space<vmem>>) attributes {dimension_semantics = [#tpu.dimension_semantics<parallel>], iteration_bounds = array<i64: 2>, scalar_prefetch = 0 : i64, scratch_operands = 0 : i64, tpu.core_type = #tpu.core_type<tc>, window_params = [{transform_indices = @transform_0, window_bounds = array<i64: 1>}, {transform_indices = @transform_1, window_bounds = array<i64: 1>}, {transform_indices = @transform_2, window_bounds = array<i64: 4, 32, 256>}, {transform_indices = @transform_3, window_bounds = array<i64: 4, 16, 256>}, {transform_indices = @transform_4, window_bounds = array<i64: 4, 2, 256>}]} {
    %c0 = arith.constant 0 : index
    %c0_0 = arith.constant 0 : index
    %c0_1 = arith.constant 0 : index
    %0 = vector.load %arg3[%c0, %c0_0, %c0_1] : memref<4x32x256xf32, #tpu.memory_space<vmem>>, vector<4x32x256xf32>
    %cst = arith.constant dense<0.000000e+00> : vector<4x256xf32>
    %1 = vector.multi_reduction <add>, %0, %cst [1] : vector<4x32x256xf32> to vector<4x256xf32>
    %2 = vector.shape_cast %1 : vector<4x256xf32> to vector<4x1x256xf32>
    %3 = arith.mulf %0, %0 : vector<4x32x256xf32>
    %cst_2 = arith.constant dense<0.000000e+00> : vector<4x256xf32>
    %4 = vector.multi_reduction <add>, %3, %cst_2 [1] : vector<4x32x256xf32> to vector<4x256xf32>
    %5 = vector.shape_cast %4 : vector<4x256xf32> to vector<4x1x256xf32>
    %cst_3 = arith.constant 3.125000e-02 : f32
    %6 = vector.broadcast %cst_3 : f32 to vector<4x1x256xf32>
    %7 = arith.mulf %2, %6 : vector<4x1x256xf32>
    %cst_4 = arith.constant 3.125000e-02 : f32
    %8 = vector.broadcast %cst_4 : f32 to vector<4x1x256xf32>
    %9 = arith.mulf %5, %8 : vector<4x1x256xf32>
    %10 = arith.mulf %7, %7 : vector<4x1x256xf32>
    %11 = arith.subf %9, %10 : vector<4x1x256xf32>
    %cst_5 = arith.constant 0.000000e+00 : f32
    %12 = vector.broadcast %cst_5 : f32 to vector<4x1x256xf32>
    %13 = arith.maximumf %11, %12 : vector<4x1x256xf32>
    %cst_6 = arith.constant 9.99999974E-6 : f32
    %14 = vector.broadcast %cst_6 : f32 to vector<4x1x256xf32>
    %15 = arith.addf %13, %14 : vector<4x1x256xf32>
    %16 = math.sqrt %15 : vector<4x1x256xf32>
    %cst_7 = arith.constant 1.000000e+00 : f32
    %17 = vector.broadcast %cst_7 : f32 to vector<4x1x256xf32>
    %18 = arith.divf %17, %16 : vector<4x1x256xf32>
    %c0_8 = arith.constant 0 : index
    %19 = memref.load %arg1[%c0_8] : memref<1xf32, #tpu.memory_space<smem>>
    %20 = vector.broadcast %19 : f32 to vector<4x1x256xf32>
    %21 = arith.mulf %18, %20 : vector<4x1x256xf32>
    %c0_9 = arith.constant 0 : index
    %22 = memref.load %arg2[%c0_9] : memref<1xf32, #tpu.memory_space<smem>>
    %23 = arith.mulf %7, %21 : vector<4x1x256xf32>
    %24 = vector.broadcast %22 : f32 to vector<4x1x256xf32>
    %25 = arith.subf %24, %23 : vector<4x1x256xf32>
    %c0_10 = arith.constant 0 : index
    %c16 = arith.constant 16 : index
    %c0_11 = arith.constant 0 : index
    %26 = vector.load %arg3[%c0_10, %c16, %c0_11] : memref<4x32x256xf32, #tpu.memory_space<vmem>>, vector<4x16x256xf32>
    %27 = vector.broadcast %21 : vector<4x1x256xf32> to vector<4x16x256xf32>
    %28 = arith.mulf %26, %27 : vector<4x16x256xf32>
    %29 = vector.broadcast %25 : vector<4x1x256xf32> to vector<4x16x256xf32>
    %30 = arith.addf %28, %29 : vector<4x16x256xf32>
    %c0_12 = arith.constant 0 : index
    %c0_13 = arith.constant 0 : index
    %c0_14 = arith.constant 0 : index
    %31 = vector.load %arg4[%c0_12, %c0_13, %c0_14] : memref<4x16x256xf32, #tpu.memory_space<vmem>>, vector<4x16x256xf32>
    tpu.vector_store %arg4[%c0_12, %c0_13, %c0_14], %30 {strides = array<i32>} : memref<4x16x256xf32, #tpu.memory_space<vmem>>, vector<4x16x256xf32>,
    %c0_15 = arith.constant 0 : index
    %c0_16 = arith.constant 0 : index
    %c0_17 = arith.constant 0 : index
    %32 = vector.load %arg5[%c0_15, %c0_16, %c0_17] : memref<4x2x256xf32, #tpu.memory_space<vmem>>, vector<4x1x256xf32>
    tpu.vector_store %arg5[%c0_15, %c0_16, %c0_17], %7 {strides = array<i32>} : memref<4x2x256xf32, #tpu.memory_space<vmem>>, vector<4x1x256xf32>,
    %c0_18 = arith.constant 0 : index
    %c1 = arith.constant 1 : index
    %c0_19 = arith.constant 0 : index
    %33 = vector.load %arg5[%c0_18, %c1, %c0_19] : memref<4x2x256xf32, #tpu.memory_space<vmem>>, vector<4x1x256xf32>
    tpu.vector_store %arg5[%c0_18, %c1, %c0_19], %16 {strides = array<i32>} : memref<4x2x256xf32, #tpu.memory_space<vmem>>, vector<4x1x256xf32>,
    return
  }
  func.func @transform_0(%arg0: i32) -> i32 {
    %c0_i32 = arith.constant 0 : i32
    %c0_i32_0 = arith.constant 0 : i32
    return %c0_i32 : i32
  }
  func.func @transform_1(%arg0: i32) -> i32 {
    %c0_i32 = arith.constant 0 : i32
    %c0_i32_0 = arith.constant 0 : i32
    return %c0_i32 : i32
  }
  func.func @transform_2(%arg0: i32) -> (i32, i32, i32) {
    %c0_i32 = arith.constant 0 : i32
    %c0_i32_0 = arith.constant 0 : i32
    %c0_i32_1 = arith.constant 0 : i32
    return %arg0, %c0_i32, %c0_i32_0 : i32, i32, i32
  }
  func.func @transform_3(%arg0: i32) -> (i32, i32, i32) {
    %c0_i32 = arith.constant 0 : i32
    %c0_i32_0 = arith.constant 0 : i32
    %c0_i32_1 = arith.constant 0 : i32
    return %arg0, %c0_i32, %c0_i32_0 : i32, i32, i32
  }
  func.func @transform_4(%arg0: i32) -> (i32, i32, i32) {
    %c0_i32 = arith.constant 0 : i32
    %c0_i32_0 = arith.constant 0 : i32
    %c0_i32_1 = arith.constant 0 : i32
    return %arg0, %c0_i32, %c0_i32_0 : i32, i32, i32
  }
}

</mosaic_0001>

<bundles_post_ra>
// kernel: tpu_custom_call.1
= control target key start
LH: loop header
LB: loop body
LE: loop exit
PB: predicated region body
PF: predicated region fallthrough
CT: control target
= control target key end

     0   :  { %s1789_s0 = inlined_call_operand.<no memory space> [shape: f32[1], index: 0, kind: input, shape index: {}]   ;;  %s1790_s1 = inlined_call_operand.<no memory space> [shape: f32[1], index: 1, kind: input, shape index: {}]   ;;  %s1791_s2 = inlined_call_operand.hbm [shape: f32[8,32,256], index: 2, kind: input, shape index: {}]   ;;  %s1792_s3 = inlined_call_operand.hbm [shape: f32[8,16,256], index: 3, kind: output, shape index: {0}]   ;;  %s1793_s4 = inlined_call_operand.hbm [shape: f32[8,2,256], index: 4, kind: output, shape index: {1}]  }
   0x1   :  { %10 = sst [smem:[#allocation2]] %s1789_s0 }
   0x2   :  { %11 = sst [smem:[#allocation3]] %s1790_s1 }
   0x3   :  { %12 = vsyncpa [#allocation5], 0 }
   0x4   :  { %14 = vsyncpa [#allocation5 + $0x1], 0 }
   0x5   :  { %15 = vsyncpa [#allocation6], 0 }
   0x6   :  { %17 = vsyncpa [#allocation6 + $0x1], 0 }
   0x7   :  { %18 = vsyncpa [#allocation9], 0 }
   0x8   :  { %20 = vsyncpa [#allocation9 + $0x1], 0  ;;  %s1231_s19 = smov 0   ;;  %s1233_s20 = smov 0  }
   0x9   :  { %s1235_s21 = smov 0   ;;  %s1237_s22 = smov 0  }
   0xa LB: > { %s1252_s0 = sadd.s32 4294967295, %s1188_s22   ;;  %s942_s1 = sadd.s32 4294967294, %s1188_s22   ;;  %s1188_s22 = sphi %s1237_s22, %s1810_s22   ;;  %s1184_s21 = sphi %s1235_s21, %s1809_s21   ;;  %s1180_s20 = sphi %s1233_s20, %s1808_s20   ;;  %s1176_s19 = sphi %s1231_s19, %s1807_s19  }
   0xb   : > { %s1256_s23 = sadd.s32 1, %s1188_s22   ;;  %s75_s24 = sadd.s32 1, %s1184_s21 }
   0xc   : > { %s72_s25 = ssub.s32 %s1188_s22, %s1256_s23  ;;  %p82_p0 = scmp.ne.s32.totalorder %s1184_s21, %s1180_s20 }
   0xd   : > { %p73_p1 = scmp.eq.s32.totalorder %s72_s25, 0  ;;  %p83_p2 = scmp.eq.s32.totalorder %s1188_s22, 0 }
   0xe   : > { %p88_p3 = scmp.ne.s32.totalorder %s1180_s20, %s1176_s19  ;;  %p89_p4 = scmp.eq.s32.totalorder %s1252_s0, 0 }
   0xf   : > { %s1268_s26 = scalar_select %p73_p1, %s1184_s21, %s75_s24  }
  0x10   : > { %p1270_p5 = por %p83_p2, %p82_p0  ;;  %p1274_p6 = por %p89_p4, %p88_p3 }
  0x11   : > { %p112_p7 = scmp.eq.s32.totalorder %s1252_s0, 1  ;;  %p118_p8 = scmp.eq.s32.totalorder %s942_s1, 1 }
  0x12   : > { %s1797_s28 = scalar_select %p1274_p6, 1, 0 }
  0x13   : > { %p993_p10 = scmp.lt.s32.totalorder %s1188_s22, 2  ;;  %p1281_p11 = por %p112_p7, %p82_p0 }
  0x14   : > { %p1285_p12 = por %p118_p8, %p88_p3  ;;  %s170_s5 = sand.u32 1, %s1184_s21  }
  0x15   : > { %s1798_s29 = scalar_select %p1281_p11, 1, 0 }
  0x16   : > { %s1799_s30 = scalar_select %p1285_p12, 1, 0 }
  0x17   : > { %s971_s6 = sshll.u32 %s1188_s22, 12  ;;  %s945_s7 = sshll.u32 %s170_s5, 8 }
  0x18   : > { %s1294_s10 = scalar_lea.hbm %s1791_s2, %s971_s6  ;;  %s174_s11 = scalar_lea.vmem [#allocation4], %s945_s7 }
  0x19   : > { %s182_s12 = sshll.u32 %s174_s11, 4  ;;  %p1298_p13 = pnand %p993_p10, %p1270_p5  ;;  %s1302_s12 = int_to_ptr.vmem [resolvable:$true] %s182_s12 }
  0x1a   : > { %s1304_s14 = scalar_lea.sflag [#allocation5], %s170_s5  ;;  %s1066_s15 = scalar_lea.hbm %s1294_s10, 4096 }
  0x1b   : > { %p1067_p0 = scmp.ne.s32.totalorder %s1294_s10, %s1066_s15  ;;  %p1068_p1 = pneg %p1298_p13 }
  0x1c   : > { %s1071_s18 = scalar_lea.hbm %s1791_s2, 8192  ;;  %p1072_p4 = scmp.lt.s32.totalorder %s1294_s10, %s1791_s2 }
  0x1d   : > { %p1069_p2 = pnand %p1068_p1, %p1067_p0  ;;  %p1073_p5 = scmp.lt.s32.totalorder %s1071_s18, %s1066_s15 }
  0x1f   : > { %p1070_p3 = pneg %p1069_p2  ;;  %p1074_p7 = por %p1073_p5, %p1072_p4 }
  0x21   : > { %p1075_p8 = pnand %p1074_p7, %p1070_p3 }
  0x23   : > { %1078 = shalt.err (!%p1075_p8)
}
  0x24   : > { %s1079_s25 = scalar_lea.vmem %s1302_s12, 4096  ;;  %s1190_s27 = smov [#allocation4]  }
  0x25   : > { %p1080_p10 = scmp.ne.s32.totalorder %s1302_s12, %s1079_s25  ;;  %s1084_s5 = sshll.u32 %s1190_s27, 4  ;;  %s1085_s5 = int_to_ptr.vmem [resolvable:$false] %s1084_s5 }
  0x26   : > { %s1086_s6 = scalar_lea.vmem %s1085_s5, 8192  ;;  %p1087_p2 = scmp.lt.s32.totalorder %s1302_s12, %s1085_s5 }
  0x27   : > { %p1082_p9 = pnand %p1080_p10, %p1068_p1  ;;  %p1088_p12 = scmp.lt.s32.totalorder %s1086_s6, %s1079_s25 }
  0x29   : > { %p1083_p0 = pneg %p1082_p9  ;;  %p1089_p11 = por %p1088_p12, %p1087_p2 }
  0x2b   : > { %p1090_p6 = pnand %p1089_p11, %p1083_p0 }
  0x2d   : > { %1093 = shalt.err (!%p1090_p6)
}
  0x2e   : > { %s1191_s7 = smov 256   ;;  %s1192_s8 = smov 16  }
  0x2f   : > { %985 = dma.hbm_to_vmem [thread:$0]  (!%p1298_p13), %s1294_s10, 4096, %s1302_s12, %s1304_s14, %s1191_s7, %s1191_s7, %s1192_s8  }
  0x30   : > { %p949_p9 = scmp.ge.s32.totalorder %s1188_s22, 1  ;;  %p190_p1 = scmp.lt.s32.totalorder %s1188_s22, 3 }
  0x32   : > { %p191_p3 = pnand %p949_p9, %p190_p1 }
  0x33   : > { %s1328_s9 = sand.u32 (!%p191_p3), 1, %s1180_s20   ;;  %p1801_p6 = scmp.ne.s32.totalorder (!%p191_p3), %s1797_s28, 0 }
  0x34   : > { %194 = sbr.rel (%p191_p3) target bundleno = 210 (0xd2), region = 32  ;;  %s950_s11 = sshll.u32 (!%p191_p3), %s1328_s9, 8 }
  0x35   : > { %s197_s15 = scalar_lea.sflag (!%p191_p3), [#allocation5], %s1328_s9  ;;  %s1332_s16 = scalar_lea.vmem (!%p191_p3), [#allocation4], %s950_s11 }
  0x39   : > { %1163 = dma.done.wait (%p1801_p6), %s197_s15, 4096  }
  0x3a   : > { %1165 = vsyncadd (%p1801_p6), %s197_s15, 4294963200  ;;  %v233_v0 = vld [vmem:[%s1332_s16] sm:$0xff]  ;;  %v235_v1 = vld [vmem:[%s1332_s16 + $0x10] sm:$0xff]  ;;  %v649_v3 = vlaneseq  ;;  %v1193_v17 = vmov 1966171168   ;;  %s1411_s28 = sld [smem:[#allocation2]] }
  0x3b   : > { %v1341_v2 = vld [vmem:[%s1332_s16 + $0x20] sm:$0xff]  ;;  %v1344_v4 = vld [vmem:[%s1332_s16 + $0x30] sm:$0xff]  ;;  %v265_v5 = vadd.f32 %v235_v1, %v233_v0  ;;  %v337_v6 = vmul.f32 %v233_v0, %v233_v0  ;;  %v339_v7 = vmul.f32 %v235_v1, %v235_v1  ;;  %v234_v9 = vld [vmem:[%s1332_s16 + $0x8] sm:$0xff]  ;;  %v1359_v18 = vunpack.c.l.s4 %v1193_v17  ;;  %s1496_s10 = sld [smem:[#allocation3]]  ;;  %s951_s12 = sshll.u32 %s1328_s9, 7 }
  0x3c   : > { %v341_v8 = vmul.f32 %v1341_v2, %v1341_v2  ;;  %v236_v10 = vld [vmem:[%s1332_s16 + $0x18] sm:$0xff]  ;;  %v343_v11 = vmul.f32 %v1344_v4, %v1344_v4  ;;  %v1353_v12 = vld [vmem:[%s1332_s16 + $0x28] sm:$0xff]  ;;  %v338_v15 = vmul.f32 %v234_v9, %v234_v9  ;;  %v241_v16 = vld [vmem:[%s1332_s16 + $0x40] sm:$0xff]  ;;  %vm1550_vm8 = vcmp.lt.s32.totalorder %v649_v3, 256  ;;  %s952_s13 = sshll.u32 %s1328_s9, 4  ;;  %s1590_s14 = scalar_lea.vmem [#allocation7], %s951_s12 }
  0x3d   : > { %v1356_v13 = vld [vmem:[%s1332_s16 + $0x38] sm:$0xff]  ;;  %v274_v14 = vadd.f32 %v236_v10, %v234_v9  ;;  %v266_v19 = vadd.f32 %v265_v5, %v1341_v2  ;;  %v369_v20 = vadd.f32 %v339_v7, %v337_v6  ;;  %v340_v21 = vmul.f32 %v236_v10, %v236_v10  ;;  %v243_v23 = vld [vmem:[%s1332_s16 + $0x50] sm:$0xff]  ;;  %v1366_v24 = vld [vmem:[%s1332_s16 + $0x60] sm:$0xff]  ;;  %s1599_s17 = scalar_lea.vmem [#allocation8], %s952_s13  ;;  %s975_s1 = sshll.u32 %s1252_s0, 8 }
  0x3e   : > { %v342_v22 = vmul.f32 %v1353_v12, %v1353_v12  ;;  %v1369_v25 = vld [vmem:[%s1332_s16 + $0x70] sm:$0xff]  ;;  %v344_v27 = vmul.f32 %v1356_v13, %v1356_v13  ;;  %v283_v28 = vadd.f32 %v243_v23, %v241_v16  ;;  %v345_v29 = vmul.f32 %v241_v16, %v241_v16  ;;  %v242_v34 = vld [vmem:[%s1332_s16 + $0x48] sm:$0xff]  ;;  %v244_v35 = vld [vmem:[%s1332_s16 + $0x58] sm:$0xff]  ;;  %s837_s18 = sshll.u32 %s1599_s17, 4  ;;  %s1702_s27 = scalar_lea.hbm %s1793_s4, %s975_s1  ;;  %s1695_s18 = int_to_ptr.vmem [resolvable:$true] %s837_s18 }
  0x3f   : > { %v275_v26 = vadd.f32 %v274_v14, %v1353_v12  ;;  %v267_v30 = vadd.f32 %v266_v19, %v1344_v4  ;;  %v370_v31 = vadd.f32 %v369_v20, %v341_v8  ;;  %v378_v32 = vadd.f32 %v340_v21, %v338_v15  ;;  %v1384_v44 = vld [vmem:[%s1332_s16 + $0x68] sm:$0xff]  ;;  %v1388_v53 = vld [vmem:[%s1332_s16 + $0x78] sm:$0xff]  ;;  %s806_s5 = scalar_lea.sflag [#allocation9], %s1328_s9  ;;  %s1094_s6 = scalar_lea.vmem %s1695_s18, 256 }
  0x40   : > { %v347_v33 = vmul.f32 %v243_v23, %v243_v23  ;;  %v284_v37 = vadd.f32 %v283_v28, %v1366_v24  ;;  %v349_v38 = vmul.f32 %v1366_v24, %v1366_v24  ;;  %v351_v39 = vmul.f32 %v1369_v25, %v1369_v25  ;;  %p1095_p11 = scmp.ne.s32.totalorder %s1695_s18, %s1094_s6  ;;  %p1804_p12 = scmp.ne.s32.totalorder %s1798_s29, 0 }
  0x41   : > { %v276_v36 = vadd.f32 %v275_v26, %v1356_v13  ;;  %v268_v40 = vrot.slane %v267_v30, 4  ;;  %v371_v41 = vadd.f32 %v370_v31, %v343_v11  ;;  %v379_v42 = vadd.f32 %v378_v32, %v342_v22  ;;  %s1194_s7 = smov [#allocation8]  }
  0x42   : > { %v387_v43 = vadd.f32 %v347_v33, %v345_v29  ;;  %v285_v46 = vadd.f32 %v284_v37, %v1369_v25  ;;  %v292_v47 = vadd.f32 %v244_v35, %v242_v34  ;;  %v346_v48 = vmul.f32 %v242_v34, %v242_v34  ;;  %p1096_p13 = pnand %p1095_p11, %p1804_p12  ;;  %s1098_s8 = sshll.u32 %s1194_s7, 4  ;;  %s1099_s8 = int_to_ptr.vmem [resolvable:$false] %s1098_s8 }
  0x43   : > { %v277_v45 = vrot.slane %v276_v36, 4  ;;  %v269_v49 = vadd.f32 %v268_v40, %v267_v30  ;;  %v372_v50 = vrot.slane %v371_v41, 4  ;;  %v380_v51 = vadd.f32 %v379_v42, %v344_v27  ;;  %v249_v42 = vld [vmem:[%s1332_s16 + $0x80] sm:$0xff]  ;;  %s1100_s11 = scalar_lea.vmem %s1099_s8, 512  ;;  %p1101_p5 = scmp.lt.s32.totalorder %s1695_s18, %s1099_s8 }
  0x44   : > { %v388_v52 = vadd.f32 %v387_v43, %v349_v38  ;;  %v286_v55 = vrot.slane %v285_v46, 4  ;;  %v293_v56 = vadd.f32 %v292_v47, %v1384_v44  ;;  %v348_v57 = vmul.f32 %v244_v35, %v244_v35  ;;  %v251_v43 = vld [vmem:[%s1332_s16 + $0x90] sm:$0xff]  ;;  %p1097_p4 = pneg %p1096_p13  ;;  %p1102_p7 = scmp.lt.s32.totalorder %s1100_s11, %s1094_s6 }
  0x45   : > { %v278_v54 = vadd.f32 %v277_v45, %v276_v36  ;;  %v270_v58 = vrot.slane %v269_v49, 2  ;;  %v373_v59 = vadd.f32 %v372_v50, %v371_v41  ;;  %v381_v60 = vrot.slane %v380_v51, 4 }
  0x46   : > { %v389_v61 = vadd.f32 %v388_v52, %v351_v39  ;;  %v287_v63 = vadd.f32 %v286_v55, %v285_v46  ;;  %v294_v0 = vadd.f32 %v293_v56, %v1388_v53  ;;  %v350_v1 = vmul.f32 %v1384_v44, %v1384_v44  ;;  %p1103_p8 = por %p1102_p7, %p1101_p5 }
  0x47   : > { %v279_v62 = vrot.slane %v278_v54, 2  ;;  %v271_v5 = vadd.f32 %v270_v58, %v269_v49  ;;  %v374_v6 = vrot.slane %v373_v59, 2  ;;  %v382_v7 = vadd.f32 %v381_v60, %v380_v51 }
  0x48   : > { %v390_v8 = vrot.slane %v389_v61, 4  ;;  %v288_v10 = vrot.slane %v287_v63, 2  ;;  %v295_v11 = vrot.slane %v294_v0, 4  ;;  %v352_v14 = vmul.f32 %v1388_v53, %v1388_v53  ;;  %p1104_p10 = pnand %p1103_p8, %p1097_p4 }
  0x49   : > { %v280_v9 = vadd.f32 %v279_v62, %v278_v54  ;;  %v272_v15 = vrot.slane %v271_v5, 1  ;;  %v375_v16 = vadd.f32 %v374_v6, %v373_v59  ;;  %v383_v17 = vrot.slane %v382_v7, 2  ;;  %v1409_v54 = vld [vmem:[%s1332_s16 + $0xa0] sm:$0xff]  ;;  %v1416_v62 = vld [vmem:[%s1332_s16 + $0xb0] sm:$0xff] }
  0x4a   : > { %v391_v19 = vadd.f32 %v390_v8, %v389_v61  ;;  %v289_v21 = vadd.f32 %v288_v10, %v287_v63  ;;  %v296_v22 = vadd.f32 %v295_v11, %v294_v0  ;;  %v396_v23 = vadd.f32 %v348_v57, %v346_v48 }
  0x4b   : > { %v281_v20 = vrot.slane %v280_v9, 1  ;;  %v273_v26 = vadd.f32 %v272_v15, %v271_v5  ;;  %v376_v27 = vrot.slane %v375_v16, 1  ;;  %v384_v28 = vadd.f32 %v383_v17, %v382_v7 }
  0x4c   : > { %v392_v29 = vrot.slane %v391_v19, 2  ;;  %v290_v31 = vrot.slane %v289_v21, 1  ;;  %v297_v32 = vrot.slane %v296_v22, 2  ;;  %v397_v33 = vadd.f32 %v396_v23, %v350_v1 }
  0x4d   : > { %v282_v30 = vadd.f32 %v281_v20, %v280_v9  ;;  %v377_v34 = vadd.f32 %v376_v27, %v375_v16  ;;  %v1396_v35 = vmul.f32 0.03125, %v273_v26  ;;  %v385_v36 = vrot.slane %v384_v28, 1 }
  0x4e   : > { %v393_v37 = vadd.f32 %v392_v29, %v391_v19  ;;  %v291_v39 = vadd.f32 %v290_v31, %v289_v21  ;;  %v298_v40 = vadd.f32 %v297_v32, %v296_v22  ;;  %v398_v41 = vadd.f32 %v397_v33, %v352_v14  ;;  %v250_v21 = vld [vmem:[%s1332_s16 + $0x88] sm:$0xff]  ;;  %v252_v22 = vld [vmem:[%s1332_s16 + $0x98] sm:$0xff] }
  0x4f   : > { %v1398_v38 = vmul.f32 0.03125, %v282_v30  ;;  %v449_v45 = vmul.f32 0.03125, %v377_v34  ;;  %v457_v46 = vmul.f32 %v1396_v35, %v1396_v35  ;;  %v386_v47 = vadd.f32 %v385_v36, %v384_v28  ;;  %v1436_v32 = vld [vmem:[%s1332_s16 + $0xa8] sm:$0xff] }
  0x50   : > { %v394_v48 = vrot.slane %v393_v37, 1  ;;  %v1406_v50 = vmul.f32 0.03125, %v291_v39  ;;  %v299_v51 = vrot.slane %v298_v40, 1  ;;  %v399_v52 = vrot.slane %v398_v41, 4  ;;  %v1445_v39 = vld [vmem:[%s1332_s16 + $0xb8] sm:$0xff] }
  0x51   : > { %v458_v49 = vmul.f32 %v1398_v38, %v1398_v38  ;;  %v465_v55 = vsub.f32 %v449_v45, %v457_v46  ;;  %v450_v56 = vmul.f32 0.03125, %v386_v47  ;;  %v301_v58 = vadd.f32 %v251_v43, %v249_v42 }
  0x52   : > { %v395_v57 = vadd.f32 %v394_v48, %v393_v37  ;;  %v459_v59 = vmul.f32 %v1406_v50, %v1406_v50  ;;  %v300_v60 = vadd.f32 %v299_v51, %v298_v40  ;;  %v400_v61 = vadd.f32 %v399_v52, %v398_v41  ;;  %v259_v51 = vld [vmem:[%s1332_s16 + $0xd0] sm:$0xff] }
  0x53   : > { %v353_v63 = vmul.f32 %v249_v42, %v249_v42  ;;  %v473_v0 = vmax.f32 %v465_v55, 0.0  ;;  %v466_v1 = vsub.f32 %v450_v56, %v458_v49  ;;  %v302_v6 = vadd.f32 %v301_v58, %v1409_v54  ;;  %v257_v49 = vld [vmem:[%s1332_s16 + $0xc0] sm:$0xff] }
  0x54   : > { %v451_v5 = vmul.f32 0.03125, %v395_v57  ;;  %v401_v7 = vrot.slane %v400_v61, 2  ;;  %v355_v8 = vmul.f32 %v251_v43, %v251_v43  ;;  %v357_v9 = vmul.f32 %v1409_v54, %v1409_v54 }
  0x55   : > { %v650_v10 = vshrl.u32 %v649_v3, 7  ;;  %v1422_v11 = vadd.f32 1e-05, %v473_v0  ;;  %v474_v14 = vmax.f32 %v466_v1, 0.0  ;;  %v303_v16 = vadd.f32 %v302_v6, %v1416_v62 }
  0x56   : > { %v467_v15 = vsub.f32 %v451_v5, %v459_v59  ;;  %v402_v17 = vadd.f32 %v401_v7, %v400_v61  ;;  %v1425_v19 = vmul.f32 0.03125, %v300_v60  ;;  %v405_v20 = vadd.f32 %v355_v8, %v353_v63  ;;  %v1464_v60 = vld [vmem:[%s1332_s16 + $0xe0] sm:$0xff] }
  0x57   : > { %v648_v23 = vunpack.c.0.s8 %v1359_v18  ;;  %1034 = vrsqrt.f32 %v1422_v11  ;;  %v359_v26 = vmul.f32 %v1416_v62, %v1416_v62  ;;  %v1433_v27 = vadd.f32 1e-05, %v474_v14 }
  0x58   : > { %v475_v28 = vmax.f32 %v467_v15, 0.0  ;;  %v403_v29 = vrot.slane %v402_v17, 1  ;;  %v304_v30 = vrot.slane %v303_v16, 4  ;;  %v406_v31 = vadd.f32 %v405_v20, %v357_v9  ;;  %v1469_v9 = vld [vmem:[%s1332_s16 + $0xf0] sm:$0xff] }
  0x59   : > { %v310_v33 = vadd.f32 %v252_v22, %v250_v21  ;;  %v354_v34 = vmul.f32 %v250_v21, %v250_v21  ;;  %v356_v36 = vmul.f32 %v252_v22, %v252_v22  ;;  %v1439_v37 = vstv %s1411_s28 }
  0x5a   : > { %1036 = vrsqrt.f32 %v1433_v27  ;;  %v460_v18 = vmul.f32 %v1425_v19, %v1425_v19  ;;  %v1447_v40 = vsub.s32 %v648_v23, %v650_v10  ;;  %v1449_v41 = vadd.f32 1e-05, %v475_v28 }
  0x5b   : > { %v404_v42 = vadd.f32 %v403_v29, %v402_v17  ;;  %v305_v43 = vadd.f32 %v304_v30, %v303_v16  ;;  %v407_v45 = vadd.f32 %v406_v31, %v359_v26  ;;  %vm491_vm0 = vcmp.eq.f32.partialorder %v1422_v11, inf  ;;  %v258_v29 = vld [vmem:[%s1332_s16 + $0xc8] sm:$0xff]  ;;  %v260_v30 = vld [vmem:[%s1332_s16 + $0xd8] sm:$0xff] }
  0x5c   : > { %v311_v46 = vadd.f32 %v310_v33, %v1436_v32  ;;  %v358_v47 = vmul.f32 %v1436_v32, %v1436_v32  ;;  %v414_v48 = vadd.f32 %v356_v36, %v354_v34  ;;  %vm493_vm1 = vcmp.eq.f32.partialorder %v1422_v11, 0.0 }
  0x5d   : > { %v494_v52 = vand.u32 2147483648, %v1422_v11  ;;  %1038 = vrsqrt.f32 %v1449_v41  ;;  %v360_v55 = vmul.f32 %v1445_v39, %v1445_v39  ;;  %v452_v56 = vmul.f32 0.03125, %v404_v42 }
  0x5e   : > { %v306_v57 = vrot.slane %v305_v43, 2  ;;  %v408_v58 = vrot.slane %v407_v45, 4  ;;  %v312_v59 = vadd.f32 %v311_v46, %v1445_v39  ;;  %vm498_vm2 = vcmp.eq.f32.partialorder %v1433_v27, inf }
  0x5f   : > { %v415_v61 = vadd.f32 %v414_v48, %v358_v47  ;;  %v319_v63 = vadd.f32 %v259_v51, %v257_v49  ;;  %v361_v0 = vmul.f32 %v257_v49, %v257_v49  ;;  %v363_v1 = vmul.f32 %v259_v51, %v259_v51 }
  0x60   : > { %vm500_vm3 = vcmp.eq.f32.partialorder %v1433_v27, 0.0  ;;  %v468_v5 = vsub.f32 %v452_v56, %v460_v18  ;;  %v307_v6 = vadd.f32 %v306_v57, %v305_v43  ;;  %v409_v7 = vadd.f32 %v408_v58, %v407_v45 }
  0x61   : > { %v313_v8 = vrot.slane %v312_v59, 4  ;;  %v501_v10 = vand.u32 2147483648, %v1433_v27  ;;  %v416_v14 = vadd.f32 %v415_v61, %v360_v55  ;;  %v320_v15 = vadd.f32 %v319_v63, %v1464_v60 }
  0x62   : > { %v365_v16 = vmul.f32 %v1464_v60, %v1464_v60  ;;  %vm505_vm4 = vcmp.eq.f32.partialorder %v1449_v41, inf  ;;  %v476_v17 = vmax.f32 %v468_v5, 0.0  ;;  %v308_v20 = vrot.slane %v307_v6, 1 }
  0x63   : > { %v410_v21 = vrot.slane %v409_v7, 2  ;;  %v314_v22 = vadd.f32 %v313_v8, %v312_v59  ;;  %vm507_vm5 = vcmp.eq.f32.partialorder %v1449_v41, 0.0  ;;  %v417_v23 = vrot.slane %v416_v14, 4 }
  0x64   : > { %v321_v26 = vadd.f32 %v320_v15, %v1469_v9  ;;  %v423_v28 = vadd.f32 %v363_v1, %v361_v0  ;;  %v1035_v31 = vpop.eup %1034  ;;  %v1480_v33 = vadd.f32 1e-05, %v476_v17  ;;  %v309_v34 = vadd.f32 %v308_v20, %v307_v6  ;;  %v1506_v15 = vld [vmem:[%s1332_s16 + $0xe8] sm:$0xff] }
  0x65   : > { %v411_v36 = vadd.f32 %v410_v21, %v409_v7  ;;  %v315_v18 = vrot.slane %v314_v22, 2  ;;  %v490_v42 = vmul.f32 %v1035_v31, %v1422_v11  ;;  %v508_v43 = vand.u32 2147483648, %v1449_v41 }
  0x66   : > { %v418_v45 = vadd.f32 %v417_v23, %v416_v14  ;;  %v322_v46 = vrot.slane %v321_v26, 4  ;;  %1040 = vrsqrt.f32 %v1480_v33  ;;  %v367_v47 = vmul.f32 %v1469_v9, %v1469_v9 }
  0x67   : > { %v424_v48 = vadd.f32 %v423_v28, %v365_v16  ;;  %v328_v49 = vadd.f32 %v260_v30, %v258_v29  ;;  %v1037_v51 = vpop.eup %1036  ;;  %v492_v55 = vsel %vm491_vm0, %v1422_v11, %v490_v42  ;;  %v412_v56 = vrot.slane %v411_v36, 1  ;;  %v1515_v28 = vld [vmem:[%s1332_s16 + $0xf8] sm:$0xff] }
  0x68   : > { %v1490_v57 = vmul.f32 0.03125, %v309_v34  ;;  %v316_v58 = vadd.f32 %v315_v18, %v314_v22  ;;  %v1494_v59 = vsel %vm493_vm1, %v494_v52, %v492_v55  ;;  %v497_v61 = vmul.f32 %v1037_v51, %v1433_v27 }
  0x69   : > { %v419_v63 = vrot.slane %v418_v45, 2  ;;  %v323_v0 = vadd.f32 %v322_v46, %v321_v26  ;;  %1042 = vrcp.f32 %v1494_v59  ;;  %v413_v1 = vadd.f32 %v412_v56, %v411_v36 }
  0x6a   : > { %v461_v5 = vmul.f32 %v1490_v57, %v1490_v57  ;;  %v317_v6 = vrot.slane %v316_v58, 1  ;;  %v1039_v7 = vpop.eup %1038  ;;  %v499_v11 = vsel %vm498_vm2, %v1433_v27, %v497_v61  ;;  %v425_v14 = vadd.f32 %v424_v48, %v367_v47 }
  0x6b   : > { %v420_v52 = vadd.f32 %v419_v63, %v418_v45  ;;  %v324_v8 = vrot.slane %v323_v0, 2  ;;  %v1510_v16 = vsel %vm500_vm3, %v501_v10, %v499_v11  ;;  %v504_v17 = vmul.f32 %v1039_v7, %v1449_v41 }
  0x6c   : > { %v453_v20 = vmul.f32 0.03125, %v413_v1  ;;  %v318_v21 = vadd.f32 %v317_v6, %v316_v58  ;;  %1044 = vrcp.f32 %v1510_v16  ;;  %v426_v26 = vrot.slane %v425_v14, 4 }
  0x6d   : > { %v421_v22 = vrot.slane %v420_v52, 1  ;;  %v325_v23 = vadd.f32 %v324_v8, %v323_v0  ;;  %v506_v31 = vsel %vm505_vm4, %v1449_v41, %v504_v17  ;;  %v329_v10 = vadd.f32 %v328_v49, %v1506_v15 }
  0x6e   : > { %v469_v34 = vsub.f32 %v453_v20, %v461_v5  ;;  %v1520_v27 = vmul.f32 0.03125, %v318_v21  ;;  %v1525_v36 = vsel %vm507_vm5, %v508_v43, %v506_v31  ;;  %v427_v45 = vadd.f32 %v426_v26, %v425_v14 }
  0x6f   : > { %v422_v18 = vadd.f32 %v421_v22, %v420_v52  ;;  %v326_v42 = vrot.slane %v325_v23, 1  ;;  %1046 = vrcp.f32 %v1525_v36  ;;  %v330_v48 = vadd.f32 %v329_v10, %v1515_v28 }
  0x70   : > { %v477_v46 = vmax.f32 %v469_v34, 0.0  ;;  %v462_v47 = vmul.f32 %v1520_v27, %v1520_v27  ;;  %v1532_v51 = vstv %s1496_s10  ;;  %v428_v49 = vrot.slane %v427_v45, 2 }
  0x71   : > { %v454_v55 = vmul.f32 0.03125, %v422_v18  ;;  %v327_v56 = vadd.f32 %v326_v42, %v325_v23  ;;  %v331_v41 = vrot.slane %v330_v48, 4  ;;  %v362_v43 = vmul.f32 %v258_v29, %v258_v29 }
  0x72   : > { %v1534_v58 = vadd.f32 1e-05, %v477_v46  ;;  %v364_v61 = vmul.f32 %v260_v30, %v260_v30  ;;  %vm512_vm6 = vcmp.eq.f32.partialorder %v1480_v33, inf  ;;  %vm514_vm7 = vcmp.eq.f32.partialorder %v1480_v33, 0.0 }
  0x73   : > { %v470_v63 = vsub.f32 %v454_v55, %v462_v47  ;;  %v429_v0 = vadd.f32 %v428_v49, %v427_v45  ;;  %v1041_v1 = vpop.eup %1040  ;;  %v515_v5 = vand.u32 2147483648, %v1480_v33  ;;  %v1540_v6 = vmul.f32 0.03125, %v327_v56 }
  0x74   : > { %1048 = vrsqrt.f32 %v1534_v58  ;;  %v366_v7 = vmul.f32 %v1506_v15, %v1506_v15  ;;  %v511_v11 = vmul.f32 %v1041_v1, %v1480_v33  ;;  %v368_v52 = vmul.f32 %v1515_v28, %v1515_v28 }
  0x75   : > { %v478_v29 = vmax.f32 %v470_v63, 0.0  ;;  %v430_v30 = vrot.slane %v429_v0, 1  ;;  %v332_v8 = vadd.f32 %v331_v41, %v330_v48  ;;  %v432_v14 = vadd.f32 %v364_v61, %v362_v43 }
  0x76   : > { %v645_v17 = vcombine.low %v1396_v35, %v1398_v38  ;;  %v660_v21 = vcombine.low %v1406_v50, %v1425_v19  ;;  %v1043_v22 = vpop.eup %1042  ;;  %v513_v23 = vsel %vm512_vm6, %v1480_v33, %v511_v11  ;;  %v675_v34 = vcombine.low %v1490_v57, %v1520_v27 }
  0x77   : > { %v1559_v26 = vadd.f32 1e-05, %v478_v29  ;;  %v431_v31 = vadd.f32 %v430_v30, %v429_v0  ;;  %v563_v3 = vmul.f32 %v1043_v22, %v1439_v37  ;;  %v1566_v10 = vsel %vm514_vm7, %v515_v5, %v513_v23 }
  0x78   : > { %v333_v18 = vrot.slane %v332_v8, 2  ;;  %v433_v42 = vadd.f32 %v432_v14, %v366_v7  ;;  %1050 = vrcp.f32 %v1566_v10  ;;  %vm519_vm9 = vcmp.eq.f32.partialorder %v1534_v58, inf }
  0x79   : > { %v522_v45 = vand.u32 2147483648, %v1534_v58  ;;  %v463_v46 = vmul.f32 %v1540_v6, %v1540_v6  ;;  %v1045_v47 = vpop.eup %1044  ;;  %v572_v48 = vmul.f32 %v563_v3, %v1396_v35  ;;  %v589_v33 = vmul.f32 %v563_v3, %v1341_v2 }
  0x7a   : > { %v591_v55 = vmul.f32 %v563_v3, %v1344_v4  ;;  %1052 = vrsqrt.f32 %v1559_v26  ;;  %v564_v56 = vmul.f32 %v1045_v47, %v1439_v37  ;;  %v455_v49 = vmul.f32 0.03125, %v431_v31 }
  0x7b   : > { %v334_v41 = vadd.f32 %v333_v18, %v332_v8  ;;  %v434_v43 = vadd.f32 %v433_v42, %v368_v52  ;;  %v581_v61 = vsub.f32 %v1532_v51, %v572_v48  ;;  %v652_v63 = vrot.slane %v645_v17, %v1447_v40 }
  0x7c   : > { %v667_v0 = vrot.slane %v660_v21, %v1447_v40  ;;  %v682_v35 = vrot.slane %v675_v34, %v1447_v40  ;;  %v1047_v1 = vpop.eup %1046  ;;  %v573_v2 = vmul.f32 %v564_v56, %v1398_v38  ;;  %v590_v4 = vmul.f32 %v564_v56, %v1353_v12 }
  0x7d   : > { %v592_v5 = vmul.f32 %v564_v56, %v1356_v13  ;;  %v471_v7 = vsub.f32 %v455_v49, %v463_v46  ;;  %v605_v11 = vadd.f32 %v589_v33, %v581_v61  ;;  %v607_v29 = vadd.f32 %v591_v55, %v581_v61 }
  0x7e   : > { %v565_v30 = vmul.f32 %v1047_v1, %v1439_v37  ;;  %v335_v52 = vrot.slane %v334_v41, 1  ;;  %v582_v8 = vsub.f32 %v1532_v51, %v573_v2  ;;  %v435_v17 = vrot.slane %v434_v43, 4 }
  0x7f   : > { %v479_v14 = vmax.f32 %v471_v7, 0.0  ;;  %v659_v21 = vrot.slane %v652_v63, %v1447_v40  ;;  %621 = vst [vmem:[%s1590_s14] sm:$0xff] %v605_v11  ;;  %623 = vst [vmem:[%s1590_s14 + $0x10] sm:$0xff] %v607_v29  ;;  %vm521_vm10 = vcmp.eq.f32.partialorder %v1534_v58, 0.0  ;;  %vm526_vm11 = vcmp.eq.f32.partialorder %v1559_v26, inf }
  0x80   : > { %v574_v12 = vmul.f32 %v565_v30, %v1406_v50  ;;  %v593_v13 = vmul.f32 %v565_v30, %v1366_v24  ;;  %v595_v38 = vmul.f32 %v565_v30, %v1369_v25  ;;  %v336_v22 = vadd.f32 %v335_v52, %v334_v41 }
  0x81   : > { %v1049_v23 = vpop.eup %1048  ;;  %v606_v31 = vadd.f32 %v590_v4, %v582_v8  ;;  %v608_v34 = vadd.f32 %v592_v5, %v582_v8  ;;  %v1597_v3 = vadd.f32 1e-05, %v479_v14  ;;  %v436_v18 = vadd.f32 %v435_v17, %v434_v43  ;;  %713 = vst.msk [vmem:[%s1599_s17] ss:$2 sm:$0x3] %vm1550_vm8, %v659_v21 }
  0x82   : > { %v583_v50 = vsub.f32 %v1532_v51, %v574_v12  ;;  %v518_v24 = vmul.f32 %v1049_v23, %v1534_v58  ;;  %v674_v25 = vrot.slane %v667_v0, %v1447_v40  ;;  %v1612_v42 = vmul.f32 0.03125, %v336_v22 }
  0x83   : > { %622 = vst [vmem:[%s1590_s14 + $0x8] sm:$0xff] %v606_v31  ;;  %624 = vst [vmem:[%s1590_s14 + $0x18] sm:$0xff] %v608_v34  ;;  %1054 = vrsqrt.f32 %v1597_v3  ;;  %v437_v33 = vrot.slane %v436_v18, 2  ;;  %vm528_vm12 = vcmp.eq.f32.partialorder %v1559_v26, 0.0  ;;  %v689_v56 = vrot.slane %v682_v35, %v1447_v40 }
  0x84   : > { %v609_v46 = vadd.f32 %v593_v13, %v583_v50  ;;  %v611_v47 = vadd.f32 %v595_v38, %v583_v50  ;;  %v520_v48 = vsel %vm519_vm9, %v1534_v58, %v518_v24  ;;  %953 = vst.msk [vmem:[%s1599_s17 + $0x4] ss:$2 sm:$0x3] %vm1550_vm8, %v674_v25  ;;  %v690_v49 = vcombine.low %v1540_v6, %v1612_v42 }
  0x85   : > { %v523_v55 = vsel %vm521_vm10, %v522_v45, %v520_v48  ;;  %v1051_v41 = vpop.eup %1050  ;;  %v438_v43 = vadd.f32 %v437_v33, %v436_v18  ;;  %v728_v58 = vcombine.low %v1494_v59, %v1510_v16  ;;  %v743_v61 = vcombine.low %v1525_v36, %v1566_v10  ;;  %954 = vst.msk [vmem:[%s1599_s17 + $0x8] ss:$2 sm:$0x3] %vm1550_vm8, %v689_v56 }
  0x86   : > { %625 = vst [vmem:[%s1590_s14 + $0x20] sm:$0xff] %v609_v46  ;;  %627 = vst [vmem:[%s1590_s14 + $0x30] sm:$0xff] %v611_v47  ;;  %1056 = vrcp.f32 %v523_v55  ;;  %v566_v45 = vmul.f32 %v1051_v41, %v1439_v37  ;;  %v529_v0 = vand.u32 2147483648, %v1559_v26  ;;  %v464_v35 = vmul.f32 %v1612_v42, %v1612_v42 }
  0x87   : > { %v1053_v63 = vpop.eup %1052  ;;  %v697_v1 = vrot.slane %v690_v49, %v1447_v40  ;;  %v439_v59 = vrot.slane %v438_v43, 1  ;;  %v735_v16 = vrot.slane %v728_v58, %v1447_v40  ;;  %v750_v36 = vrot.slane %v743_v61, %v1447_v40 }
  0x88   : > { %v525_v2 = vmul.f32 %v1053_v63, %v1559_v26  ;;  %v575_v10 = vmul.f32 %v566_v45, %v1425_v19  ;;  %v594_v4 = vmul.f32 %v566_v45, %v1384_v44  ;;  %v596_v5 = vmul.f32 %v566_v45, %v1388_v53 }
  0x89   : > { %v704_v7 = vrot.slane %v697_v1, %v1447_v40  ;;  %v440_v29 = vadd.f32 %v439_v59, %v438_v43  ;;  %v742_v30 = vrot.slane %v735_v16, %v1447_v40  ;;  %v757_v52 = vrot.slane %v750_v36, %v1447_v40 }
  0x8a   : > { %v527_v11 = vsel %vm526_vm11, %v1559_v26, %v525_v2  ;;  %v584_v8 = vsub.f32 %v1532_v51, %v575_v10  ;;  %vm533_vm13 = vcmp.eq.f32.partialorder %v1597_v3, inf  ;;  %v536_v13 = vand.u32 2147483648, %v1597_v3 }
  0x8b   : > { %v530_v44 = vsel %vm528_vm12, %v529_v0, %v527_v11  ;;  %955 = vst.msk [vmem:[%s1599_s17 + $0xc] ss:$2 sm:$0x3] %vm1550_vm8, %v704_v7  ;;  %v456_v53 = vmul.f32 0.03125, %v440_v29  ;;  %vm535_vm14 = vcmp.eq.f32.partialorder %v1597_v3, 0.0 }
  0x8c   : > { %1058 = vrcp.f32 %v530_v44  ;;  %956 = vst.msk [vmem:[%s1599_s17 + $0x1] ss:$2 sm:$0x3] %vm1550_vm8, %v742_v30  ;;  %957 = vst.msk [vmem:[%s1599_s17 + $0x5] ss:$2 sm:$0x3] %vm1550_vm8, %v757_v52  ;;  %v758_v19 = vcombine.low %v523_v55, %v530_v44  ;;  %v610_v14 = vadd.f32 %v594_v4, %v584_v8  ;;  %v612_v17 = vadd.f32 %v596_v5, %v584_v8 }
  0x8d   : > { %v472_v21 = vsub.f32 %v456_v53, %v464_v35 }
  0x8e   : > { %v765_v12 = vrot.slane %v758_v19, %v1447_v40  ;;  %626 = vst [vmem:[%s1590_s14 + $0x28] sm:$0xff] %v610_v14  ;;  %628 = vst [vmem:[%s1590_s14 + $0x38] sm:$0xff] %v612_v17 }
  0x8f   : > { %v480_v38 = vmax.f32 %v472_v21, 0.0 }
  0x90   : > { %v1055_v26 = vpop.eup %1054  ;;  %v772_v22 = vrot.slane %v765_v12, %v1447_v40 }
  0x91   : > { %v532_v23 = vmul.f32 %v1055_v26, %v1597_v3  ;;  %v488_v31 = vadd.f32 1e-05, %v480_v38 }
  0x92   : > { %958 = vst.msk [vmem:[%s1599_s17 + $0x9] ss:$2 sm:$0x3] %vm1550_vm8, %v772_v22 }
  0x93   : > { %v1057_v34 = vpop.eup %1056  ;;  %v534_v18 = vsel %vm533_vm13, %v1597_v3, %v532_v23  ;;  %1060 = vrsqrt.f32 %v488_v31  ;;  %vm540_vm15 = vcmp.eq.f32.partialorder %v488_v31, inf  ;;  %v543_v61 = vand.u32 2147483648, %v488_v31 }
  0x94   : > { %v567_v50 = vmul.f32 %v1057_v34, %v1439_v37  ;;  %v537_v24 = vsel %vm535_vm14, %v536_v13, %v534_v18  ;;  %vm542_vm0 = vcmp.eq.f32.partialorder %v488_v31, 0.0 }
  0x95   : > { %1062 = vrcp.f32 %v537_v24 }
  0x96   : > { %v576_v25 = vmul.f32 %v567_v50, %v1490_v57  ;;  %v597_v46 = vmul.f32 %v567_v50, %v1409_v54  ;;  %v599_v47 = vmul.f32 %v567_v50, %v1416_v62 }
  0x98   : > { %v585_v48 = vsub.f32 %v1532_v51, %v576_v25 }
  0x99   : > { %v1059_v33 = vpop.eup %1058 }
  0x9a   : > { %v613_v55 = vadd.f32 %v597_v46, %v585_v48  ;;  %v568_v3 = vmul.f32 %v1059_v33, %v1439_v37  ;;  %v615_v56 = vadd.f32 %v599_v47, %v585_v48 }
  0x9c   : > { %629 = vst [vmem:[%s1590_s14 + $0x40] sm:$0xff] %v613_v55  ;;  %v577_v49 = vmul.f32 %v568_v3, %v1520_v27  ;;  %v598_v41 = vmul.f32 %v568_v3, %v1436_v32  ;;  %631 = vst [vmem:[%s1590_s14 + $0x50] sm:$0xff] %v615_v56  ;;  %v600_v57 = vmul.f32 %v568_v3, %v1445_v39 }
  0x9e   : > { %v586_v54 = vsub.f32 %v1532_v51, %v577_v49 }
  0xa0   : > { %v614_v62 = vadd.f32 %v598_v41, %v586_v54  ;;  %v616_v43 = vadd.f32 %v600_v57, %v586_v54  ;;  %v1061_v58 = vpop.eup %1060 }
  0xa1   : > { %v539_v45 = vmul.f32 %v1061_v58, %v488_v31 }
  0xa2   : > { %v1063_v63 = vpop.eup %1062  ;;  %630 = vst [vmem:[%s1590_s14 + $0x48] sm:$0xff] %v614_v62  ;;  %632 = vst [vmem:[%s1590_s14 + $0x58] sm:$0xff] %v616_v43 }
  0xa3   : > { %v569_v27 = vmul.f32 %v1063_v63, %v1439_v37  ;;  %v541_v32 = vsel %vm540_vm15, %v488_v31, %v539_v45 }
  0xa4   : > { %v544_v35 = vsel %vm542_vm0, %v543_v61, %v541_v32 }
  0xa5   : > { %v578_v39 = vmul.f32 %v569_v27, %v1540_v6  ;;  %v601_v0 = vmul.f32 %v569_v27, %v1464_v60  ;;  %v603_v1 = vmul.f32 %v569_v27, %v1469_v9  ;;  %1064 = vrcp.f32 %v544_v35 }
  0xa6   : > { %v773_v2 = vcombine.low %v537_v24, %v544_v35 }
  0xa7   : > { %v587_v59 = vsub.f32 %v1532_v51, %v578_v39 }
  0xa8   : > { %v780_v6 = vrot.slane %v773_v2, %v1447_v40 }
  0xa9   : > { %v617_v16 = vadd.f32 %v601_v0, %v587_v59  ;;  %v619_v60 = vadd.f32 %v603_v1, %v587_v59 }
  0xaa   : > { %v787_v36 = vrot.slane %v780_v6, %v1447_v40 }
  0xab   : > { %633 = vst [vmem:[%s1590_s14 + $0x60] sm:$0xff] %v617_v16  ;;  %635 = vst [vmem:[%s1590_s14 + $0x70] sm:$0xff] %v619_v60 }
  0xac   : > { %959 = vst.msk [vmem:[%s1599_s17 + $0xd] ss:$2 sm:$0x3] %vm1550_vm8, %v787_v36 }
  0xad   : > { %1107 = shalt.err (!%p1104_p10)
}
  0xae   : > { %s1108_s15 = scalar_lea.hbm %s1702_s27, 256  ;;  %s1112_s10 = scalar_lea.hbm %s1793_s4, 512 }
  0xaf   : > { %p1109_p0 = scmp.ne.s32.totalorder %s1702_s27, %s1108_s15  ;;  %p1113_p1 = scmp.lt.s32.totalorder %s1702_s27, %s1793_s4 }
  0xb0   : > { %p1114_p3 = scmp.lt.s32.totalorder %s1112_s10, %s1108_s15 }
  0xb1   : > { %p1110_p2 = pnand %p1109_p0, %p1804_p12 }
  0xb2   : > { %p1115_p6 = por %p1114_p3, %p1113_p1 }
  0xb3   : > { %p1111_p9 = pneg %p1110_p2 }
  0xb5   : > { %p1116_p11 = pnand %p1115_p6, %p1111_p9 }
  0xb7   : > { %1119 = shalt.err (!%p1116_p11)
}
  0xb8   : > { %s1195_s17 = smov 64   ;;  %s1196_s1 = smov 4   ;;  %v1065_v40 = vpop.eup %1064 }
  0xb9   : > { %979 = dma.vmem_to_hbm [thread:$0]  (%p1804_p12), %s1695_s18, 256, %s1702_s27, %s806_s5, %s1195_s17, %s1195_s17, %s1196_s1   ;;  %v570_v9 = vmul.f32 %v1065_v40, %v1439_v37 }
  0xba   : > { %s973_s24 = sshll.u32 %s1252_s0, 11  ;;  %s820_s25 = sshll.u32 %s1590_s14, 4  ;;  %s1744_s25 = int_to_ptr.vmem [resolvable:$true] %s820_s25 }
  0xbb   : > { %v579_v20 = vmul.f32 %v570_v9, %v1612_v42  ;;  %v602_v10 = vmul.f32 %v570_v9, %v1506_v15  ;;  %v604_v4 = vmul.f32 %v570_v9, %v1515_v28  ;;  %s1742_s8 = scalar_lea.hbm %s1792_s3, %s973_s24  ;;  %s801_s18 = scalar_lea.sflag [#allocation6], %s1328_s9 }
  0xbc   : > { %s1120_s27 = scalar_lea.vmem %s1744_s25, 2048  ;;  %s1197_s0 = smov [#allocation7]  }
  0xbd   : > { %v588_v5 = vsub.f32 %v1532_v51, %v579_v20  ;;  %p1121_p13 = scmp.ne.s32.totalorder %s1744_s25, %s1120_s27  ;;  %s1124_s5 = sshll.u32 %s1197_s0, 4  ;;  %s1125_s5 = int_to_ptr.vmem [resolvable:$false] %s1124_s5 }
  0xbe   : > { %s1126_s11 = scalar_lea.vmem %s1125_s5, 4096  ;;  %p1127_p7 = scmp.lt.s32.totalorder %s1744_s25, %s1125_s5 }
  0xbf   : > { %v618_v37 = vadd.f32 %v602_v10, %v588_v5  ;;  %v620_v42 = vadd.f32 %v604_v4, %v588_v5  ;;  %p1122_p4 = pnand %p1121_p13, %p1804_p12  ;;  %p1128_p8 = scmp.lt.s32.totalorder %s1126_s11, %s1120_s27 }
  0xc1   : > { %634 = vst [vmem:[%s1590_s14 + $0x68] sm:$0xff] %v618_v37  ;;  %636 = vst [vmem:[%s1590_s14 + $0x78] sm:$0xff] %v620_v42  ;;  %p1123_p5 = pneg %p1122_p4  ;;  %p1129_p10 = por %p1128_p8, %p1127_p7 }
  0xc3   : > { %p1130_p0 = pnand %p1129_p10, %p1123_p5 }
  0xc5   : > { %1133 = shalt.err (!%p1130_p0)
}
  0xc6   : > { %s1134_s14 = scalar_lea.hbm %s1742_s8, 2048  ;;  %s1138_s28 = scalar_lea.hbm %s1792_s3, 4096 }
  0xc7   : > { %p1135_p2 = scmp.ne.s32.totalorder %s1742_s8, %s1134_s14  ;;  %p1139_p3 = scmp.lt.s32.totalorder %s1742_s8, %s1792_s3 }
  0xc8   : > { %p1140_p6 = scmp.lt.s32.totalorder %s1138_s28, %s1134_s14 }
  0xc9   : > { %p1136_p9 = pnand %p1135_p2, %p1804_p12 }
  0xca   : > { %p1141_p11 = por %p1140_p6, %p1139_p3 }
  0xcb   : > { %p1137_p1 = pneg %p1136_p9 }
  0xcd   : > { %p1142_p13 = pnand %p1141_p11, %p1137_p1 }
  0xcf   : > { %1145 = shalt.err (!%p1142_p13)
}
  0xd0   : > { %s1198_s13 = smov 256   ;;  %s1199_s17 = smov 16  }
  0xd1   : > { %978 = dma.vmem_to_hbm [thread:$0]  (%p1804_p12), %s1744_s25, 2048, %s1742_s8, %s801_s18, %s1198_s13, %s1198_s13, %s1199_s17  }
  0xd2 PF: > { %s852_s1 = sand.u32 1, %s1176_s19   ;;  %p1805_p4 = scmp.ne.s32.totalorder %s1799_s30, 0 }
  0xd3   : > { %p1806_p5 = scmp.ge.s32.totalorder %s1188_s22, 2  ;;  %s853_s24 = scalar_lea.sflag [#allocation6], %s852_s1 }
  0xd5   : > { %p987_p7 = pnand %p1806_p5, %p1805_p4 }
  0xd7   : > { %p988_p8 = pneg %p987_p7 }
  0xd9   : > { %1167 = dma.done.wait (%p988_p8), %s853_s24, 2048  }
  0xda   : > { %1169 = vsyncadd (%p988_p8), %s853_s24, 4294965248  ;;  %s862_s6 = scalar_lea.sflag [#allocation9], %s852_s1 }
  0xdb   : > { %1171 = dma.done.wait (%p988_p8), %s862_s6, 256  }
  0xdc   : > { %1173 = vsyncadd (%p988_p8), %s862_s6, 4294967040  ;;  %p23_p12 = scmp.ge.s32.totalorder %s1256_s23, 4   ;;  %s1807_s19 = smov %s1180_s20 }
  0xdd   : > { %s1808_s20 = smov %s1184_s21  ;;  %s1809_s21 = smov %s1268_s26 }
  0xde   : > { %s1810_s22 = smov %s1256_s23  ;;  %25 = sbr.rel (!%p23_p12) target bundleno = 10 (0xa), region = 101 }
  0xe3   :  { %867 = vsyncpa [#allocation5], 1 }
  0xe4   :  { %869 = vsyncpa [#allocation5 + $0x1], 1 }
  0xe5   :  { %870 = vsyncpa [#allocation6], 1 }
  0xe6   :  { %872 = vsyncpa [#allocation6 + $0x1], 1 }
  0xe7   :  { %873 = vsyncpa [#allocation9], 1 }
  0xe8   :  { %875 = vsyncpa [#allocation9 + $0x1], 1 }

</bundles_post_ra>
